<compile_context>
chip_gen: v6e
topology: v6e:2x2x1
jax: 0.10.0
libtpu: 0.0.40
codegen_flags: <defaults>
</compile_context>

<pallas_src>
import jax
import jax.numpy as jnp
from jax import lax
from jax.experimental import pallas as pl
from jax.experimental.pallas import tpu as pltpu


def _round_up(x, m):
    return ((x + m - 1) // m) * m


def _cdiv(a, b):
    return (a + b - 1) // b


def _vmem_capacity_bytes():
    try:
        cap = getattr(pltpu.get_tpu_info(), "vmem_capacity_bytes", None)
        if cap:
            return int(cap)
    except Exception:
        pass
    return 64 << 20  # conservative fallback (v7x-sized part)


def _avg_pool_kernel(pidx_ref, feat_ref, sum_ref, cnt_ref):
    """grid = (point_split, voxel_tiles, point_tiles); last axis is the reduction."""
    j = pl.program_id(2)

    @pl.when(j == 0)
    def _():
        sum_ref[...] = jnp.zeros_like(sum_ref)
        cnt_ref[...] = jnp.zeros_like(cnt_ref)

    tv = sum_ref.shape[0]

    # One-hot scatter mask: voxel-row iota vs. (tile-shifted) per-point voxel id.
    # Padded tail points carry pidx = -1 and never match. Compare + cast fused
    # into a single select.
    v_base = pl.program_id(1) * tv
    local = pidx_ref[...] - v_base                                   # (1, tn) i32
    rows = lax.broadcasted_iota(jnp.int32, (tv, pidx_ref.shape[1]), 0)
    maskf = jnp.where(rows == local, 1.0, 0.0)                       # (tv, tn) f32

    # Per-voxel point counts: exact f32 row-sum of the 0/1 mask (XLU).
    cnt_ref[...] += jnp.sum(maskf, axis=1, keepdims=True)

    # Scatter-sum via MXU. bf16 features -> bf16 mask (0/1 exact in bf16).
    if feat_ref.dtype == jnp.float32:
        mask = maskf
    else:
        mask = maskf.astype(feat_ref.dtype)
    sum_ref[...] += jnp.dot(mask, feat_ref[...],
                            preferred_element_type=jnp.float32)


def _select_tiles(K3, C, N, budget, feat_itemsize):
    """Pick (tn, tv): minimize feature re-streams (ceil(K3/tv)), then grid steps."""
    N128 = _round_up(max(N, 1), 128)
    Cl = _round_up(C, 128)            # in-VMEM lane width of feat / sum tiles
    best = None
    for tn_c in (2048, 1024, 512, 256, 128):
        tn = min(tn_c, N128)
        # per voxel row: mask / iota / compare temporaries (~12 B per point) +
        # double-buffered lane-padded sum block + dot temp + count column.
        per_row = 12 * tn + 12 * Cl + 1024
        # fixed: double-buffered feat + pidx input tiles, slack for compiler temps.
        fixed = 2 * tn * Cl * feat_itemsize + 64 * tn + (512 << 10)
        avail = budget - fixed
        if avail < 16 * per_row:
            continue
        tv = avail // per_row
        if tv >= K3:
            tv = K3
        elif tv >= 256:
            tv = (tv // 256) * 256    # MXU-friendly M dimension
        else:
            tv = (tv // 16) * 16      # sublane-aligned even for bf16 layouts
        passes = _cdiv(K3, tv)
        steps = passes * _cdiv(N128, tn)
        key = (passes, steps, -tn)
        if best is None or key < best[0]:
            best = (key, tn, tv)
    if best is None:                  # minuscule-budget fallback
        return min(128, N128), (K3 if K3 <= 16 else 16)
    return best[1], best[2]


def avg_pooling(point_feat, points, grid_size, *, tv=None, tn=None, vmem_budget=None):
    """Average-pool point features (N, C) into a (k, k, k, C) voxel grid.

    Matches AvgPoolingModule.forward: voxel id = floor((p + 1) * k / 2) @ [k^2, k, 1];
    per-axis indices are clamped to [0, k-1] so p == +1.0 lands in the last voxel
    instead of aliasing a neighbour. Empty voxels produce 0.
    """
    N, C = point_feat.shape
    k = int(grid_size)
    K3 = k ** 3

    # --- voxel index per point (same formula as the torch module, + clamp) ---
    ks_vec = jnp.array([k * k, k, 1], dtype=jnp.int32)
    idx = jnp.floor((points + 1.0) * (k / 2.0)).astype(jnp.int32)
    idx = jnp.clip(idx, 0, k - 1)
    pidx = idx @ ks_vec                                               # (N,) in [0, K3)

    # --- generation-aware VMEM sizing (v7x: 64 MiB, v5e/v6e: 128 MiB) ---
    cap = _vmem_capacity_bytes()
    if vmem_budget is None:
        vmem_budget = min(int(cap * 0.72), 96 << 20)   # ~46 MiB on v7x, ~92 MiB on v5e/v6e
    vmem_budget = min(int(vmem_budget), int(cap * 0.85))
    vmem_limit = int(min(vmem_budget + (8 << 20), cap - (2 << 20)))

    # --- tile selection ---
    auto_tn, auto_tv = _select_tiles(K3, C, N, vmem_budget, point_feat.dtype.itemsize)
    if tn is None:
        tn = auto_tn
    else:
        tn = max(128, _round_up(int(tn), 128))
    if tv is None:
        tv = auto_tv
    else:
        tv = int(tv)
    tv = min(tv, K3)
    if tv < K3:
        tv = max(8, (tv // 8) * 8)

    n_vox = _cdiv(K3, tv)
    K3_pad = n_vox * tv

    # Split the point axis into two "parallel" blocks when the voxel axis alone
    # cannot feed both TensorCores of a dual-core chip (v7x megacore).
    N128 = _round_up(N, 128)
    n_split = 2 if (n_vox == 1 and _cdiv(N128, tn) >= 2) else 1

    N_pad = _round_up(N, n_split * tn)
    n_pt = N_pad // (n_split * tn)

    # --- pad inputs (native channel width; pidx = -1 marks padded tail rows) ---
    feat_pad = point_feat if N_pad == N else jnp.pad(point_feat, ((0, N_pad - N), (0, 0)))
    pidx_pad = jnp.full((1, N_pad), -1, dtype=jnp.int32).at[0, :N].set(pidx)

    grid = (n_split, n_vox, n_pt)

    # TODO(synk): for large grid_size (k >= 16) add a bucketed path (sort points by
    # voxel tile + PrefetchScalarGridSpec scalar prefetch of per-tile offsets) so each
    # voxel tile only contracts over its own points instead of the dense O(K3*N*C) mask matmul.
    sums, cnts = pl.pallas_call(
        _avg_pool_kernel,
        out_shape=(
            jax.ShapeDtypeStruct((n_split, K3_pad, C), jnp.float32),
            jax.ShapeDtypeStruct((n_split, K3_pad, 1), jnp.float32),
        ),
        grid_spec=pltpu.PrefetchScalarGridSpec(
            num_scalar_prefetch=0,
            grid=grid,
            in_specs=[
                pl.BlockSpec((1, tn), lambda s, i, j: (0, s * n_pt + j)),    # pidx tile
                pl.BlockSpec((tn, C), lambda s, i, j: (s * n_pt + j, 0)),    # feat tile (native C)
            ],
            out_specs=(
                pl.BlockSpec((None, tv, C), lambda s, i, j: (s, i, 0)),      # partial sums
                pl.BlockSpec((None, tv, 1), lambda s, i, j: (s, i, 0)),      # partial counts
            ),
        ),
        compiler_params=pltpu.CompilerParams(
            dimension_semantics=("parallel", "parallel", "arbitrary"),
            vmem_limit_bytes=vmem_limit),
    )(pidx_pad, feat_pad)

    # combine point-splits, strip voxel padding, normalize (empty voxels -> 0)
    sums = jnp.sum(sums, axis=0)[:K3]                                 # (K3, C) f32
    cnts = jnp.sum(cnts, axis=0)[:K3]                                 # (K3, 1) f32
    out = jnp.where(cnts > 0, sums / jnp.where(cnts > 0, cnts, 1.0), 0.0)
    return out.astype(point_feat.dtype).reshape(k, k, k, C)


def _reference(point_feat, points, k):
    """Pure-JAX scatter-add reference (exact adds, f32 accumulation)."""
    N, C = point_feat.shape
    K3 = k ** 3
    ks_vec = jnp.array([k * k, k, 1], dtype=jnp.int32)
    idx = jnp.clip(jnp.floor((points + 1.0) * (k / 2.0)).astype(jnp.int32), 0, k - 1)
    pidx = idx @ ks_vec
    feat32 = point_feat.astype(jnp.float32)
    sums = jnp.zeros((K3, C), jnp.float32).at[pidx].add(feat32)
    cnts = jnp.zeros((K3, 1), jnp.float32).at[pidx].add(1.0)
    out = jnp.where(cnts > 0, sums / jnp.where(cnts > 0, cnts, 1.0), 0.0)
    return out.reshape(k, k, k, C)


if __name__ == "__main__":
    key = jax.random.PRNGKey(0)
    k1, k2, k3, k4 = jax.random.split(key, 4)

    # case 1: tile-aligned small shapes + exact-boundary points (exercise the clamp)
    N, C, gs = 256, 32, 4
    points = jax.random.uniform(k1, (N, 3), jnp.float32, minval=-1.0, maxval=1.0)
    points = points.at[0].set(jnp.array([1.0, 1.0, 1.0], jnp.float32))
    points = points.at[1].set(jnp.array([-1.0, 1.0, -1.0], jnp.float32))
    feat = jax.random.normal(k2, (N, C), jnp.float32)
    out = jax.block_until_ready(avg_pooling(feat, points, gs))
    assert out.shape == (gs, gs, gs, C)
    ref = _reference(feat, points, gs)
    assert jnp.allclose(out, ref, atol=1e-5, rtol=1e-5), "case 1 mismatch"

    # case 2: ragged N (exercises pidx = -1 tail padding), odd C and K3
    N2, C2, gs2 = 200, 20, 3
    points2 = jax.random.uniform(k3, (N2, 3), jnp.float32, minval=-1.0, maxval=1.0)
    feat2 = jax.random.normal(k4, (N2, C2), jnp.float32)
    out2 = jax.block_until_ready(avg_pooling(feat2, points2, gs2))
    assert out2.shape == (gs2, gs2, gs2, C2)
    ref2 = _reference(feat2, points2, gs2)
    assert jnp.allclose(out2, ref2, atol=1e-5, rtol=1e-5), "case 2 mismatch"

    # case 3: bf16 features -> bf16 one-hot mask on the MXU (counts stay exact f32)
    feat_bf = feat.astype(jnp.bfloat16)
    out3 = jax.block_until_ready(avg_pooling(feat_bf, points, gs))
    ref3 = _reference(feat_bf, points, gs)
    assert out3.dtype == jnp.bfloat16
    assert jnp.allclose(out3.astype(jnp.float32), ref3, atol=1e-2, rtol=1e-2), "case 3 mismatch"

    # TODO(synk): backward pass (avg_pooling_backward / custom VJP) not implemented; forward only.
    print("KERNEL_OK")
</pallas_src>

<mosaic_0001>
module attributes {stable_mosaic.version = 11 : i64} {
  func.func @_avg_pool_kernel(%arg0: i32, %arg1: i32, %arg2: i32, %arg3: memref<1x256xi32, #tpu.memory_space<vmem>>, %arg4: memref<256x32xf32, #tpu.memory_space<vmem>>, %arg5: memref<1x64x32xf32, #tpu.memory_space<vmem>>, %arg6: memref<1x64x1xf32, #tpu.memory_space<vmem>>) attributes {dimension_semantics = [#tpu.dimension_semantics<parallel>, #tpu.dimension_semantics<parallel>, #tpu.dimension_semantics<arbitrary>], iteration_bounds = array<i64: 1, 1, 1>, scalar_prefetch = 0 : i64, scratch_operands = 0 : i64, tpu.core_type = #tpu.core_type<tc>, window_params = [{transform_indices = @transform_0, window_bounds = array<i64: 1, 256>}, {transform_indices = @transform_1, window_bounds = array<i64: 256, 32>}, {transform_indices = @transform_2, window_bounds = array<i64: 1, 64, 32>}, {transform_indices = @transform_3, window_bounds = array<i64: 1, 64, 1>}]} {
    %c0_i32 = arith.constant 0 : i32
    %0 = arith.cmpi eq, %arg2, %c0_i32 : i32
    %1 = arith.extui %0 : i1 to i32
    %c0_i32_0 = arith.constant 0 : i32
    %2 = arith.cmpi ne, %1, %c0_i32_0 : i32
    scf.if %2 {
      %cst_19 = arith.constant 0.000000e+00 : f32
      %29 = vector.broadcast %cst_19 : f32 to vector<64x32xf32>
      %c0_20 = arith.constant 0 : index
      %c0_21 = arith.constant 0 : index
      %c0_22 = arith.constant 0 : index
      %30 = vector.load %arg5[%c0_20, %c0_21, %c0_22] : memref<1x64x32xf32, #tpu.memory_space<vmem>>, vector<1x64x32xf32>
      %31 = vector.shape_cast %30 : vector<1x64x32xf32> to vector<64x32xf32>
      %32 = vector.shape_cast %29 : vector<64x32xf32> to vector<1x64x32xf32>
      tpu.vector_store %arg5[%c0_20, %c0_21, %c0_22], %32 {strides = array<i32>} : memref<1x64x32xf32, #tpu.memory_space<vmem>>, vector<1x64x32xf32>,
      %cst_23 = arith.constant 0.000000e+00 : f32
      %33 = vector.broadcast %cst_23 : f32 to vector<64x1xf32>
      %c0_24 = arith.constant 0 : index
      %c0_25 = arith.constant 0 : index
      %c0_26 = arith.constant 0 : index
      %34 = vector.load %arg6[%c0_24, %c0_25, %c0_26] : memref<1x64x1xf32, #tpu.memory_space<vmem>>, vector<1x64x1xf32>
      %35 = vector.shape_cast %34 : vector<1x64x1xf32> to vector<64x1xf32>
      %36 = vector.shape_cast %33 : vector<64x1xf32> to vector<1x64x1xf32>
      tpu.vector_store %arg6[%c0_24, %c0_25, %c0_26], %36 {strides = array<i32>} : memref<1x64x1xf32, #tpu.memory_space<vmem>>, vector<1x64x1xf32>,
    } else {
    }
    %c64_i32 = arith.constant 64 : i32
    %3 = arith.muli %arg1, %c64_i32 : i32
    %c0 = arith.constant 0 : index
    %c0_1 = arith.constant 0 : index
    %4 = vector.load %arg3[%c0, %c0_1] : memref<1x256xi32, #tpu.memory_space<vmem>>, vector<1x256xi32>
    %5 = vector.broadcast %3 : i32 to vector<1x256xi32>
    %6 = arith.subi %4, %5 : vector<1x256xi32>
    %7 = tpu.iota {dimensions = array<i32: 0>} : vector<64x256xi32>
    %8 = vector.broadcast %6 : vector<1x256xi32> to vector<64x256xi32>
    %9 = arith.cmpi eq, %7, %8 : vector<64x256xi32>
    %cst = arith.constant 1.000000e+00 : f32
    %cst_2 = arith.constant 0.000000e+00 : f32
    %10 = vector.broadcast %cst : f32 to vector<64x256xf32>
    %11 = vector.broadcast %cst_2 : f32 to vector<64x256xf32>
    %12 = arith.select %9, %10, %11 : vector<64x256xi1>, vector<64x256xf32>
    %c0_3 = arith.constant 0 : index
    %c0_4 = arith.constant 0 : index
    %c0_5 = arith.constant 0 : index
    %13 = vector.load %arg6[%c0_3, %c0_4, %c0_5] : memref<1x64x1xf32, #tpu.memory_space<vmem>>, vector<1x64x1xf32>
    %14 = vector.shape_cast %13 : vector<1x64x1xf32> to vector<64x1xf32>
    %cst_6 = arith.constant dense<0.000000e+00> : vector<64xf32>
    %15 = vector.multi_reduction <add>, %12, %cst_6 [1] : vector<64x256xf32> to vector<64xf32>
    %16 = vector.shape_cast %15 : vector<64xf32> to vector<64x1xf32>
    %17 = arith.addf %14, %16 : vector<64x1xf32>
    %c0_7 = arith.constant 0 : index
    %c0_8 = arith.constant 0 : index
    %c0_9 = arith.constant 0 : index
    %18 = vector.load %arg6[%c0_7, %c0_8, %c0_9] : memref<1x64x1xf32, #tpu.memory_space<vmem>>, vector<1x64x1xf32>
    %19 = vector.shape_cast %18 : vector<1x64x1xf32> to vector<64x1xf32>
    %20 = vector.shape_cast %17 : vector<64x1xf32> to vector<1x64x1xf32>
    tpu.vector_store %arg6[%c0_7, %c0_8, %c0_9], %20 {strides = array<i32>} : memref<1x64x1xf32, #tpu.memory_space<vmem>>, vector<1x64x1xf32>,
    %c0_10 = arith.constant 0 : index
    %c0_11 = arith.constant 0 : index
    %c0_12 = arith.constant 0 : index
    %21 = vector.load %arg5[%c0_10, %c0_11, %c0_12] : memref<1x64x32xf32, #tpu.memory_space<vmem>>, vector<1x64x32xf32>
    %22 = vector.shape_cast %21 : vector<1x64x32xf32> to vector<64x32xf32>
    %c0_13 = arith.constant 0 : index
    %c0_14 = arith.constant 0 : index
    %23 = vector.load %arg4[%c0_13, %c0_14] : memref<256x32xf32, #tpu.memory_space<vmem>>, vector<256x32xf32>
    %cst_15 = arith.constant dense<0.000000e+00> : vector<64x32xf32>
    %24 = tpu.matmul %12, %23, %cst_15 {dimension_numbers = #tpu.dot_dimension_numbers<[1], [0], [0], [1], [0, 0, 1, 1], [], []>} : vector<64x256xf32>, vector<256x32xf32>, vector<64x32xf32> -> vector<64x32xf32>
    %25 = arith.addf %22, %24 : vector<64x32xf32>
    %c0_16 = arith.constant 0 : index
    %c0_17 = arith.constant 0 : index
    %c0_18 = arith.constant 0 : index
    %26 = vector.load %arg5[%c0_16, %c0_17, %c0_18] : memref<1x64x32xf32, #tpu.memory_space<vmem>>, vector<1x64x32xf32>
    %27 = vector.shape_cast %26 : vector<1x64x32xf32> to vector<64x32xf32>
    %28 = vector.shape_cast %25 : vector<64x32xf32> to vector<1x64x32xf32>
    tpu.vector_store %arg5[%c0_16, %c0_17, %c0_18], %28 {strides = array<i32>} : memref<1x64x32xf32, #tpu.memory_space<vmem>>, vector<1x64x32xf32>,
    return
  }
  func.func @transform_0(%arg0: i32, %arg1: i32, %arg2: i32) -> (i32, i32) {
    %c1_i32 = arith.constant 1 : i32
    %0 = arith.muli %arg0, %c1_i32 : i32
    %1 = arith.addi %0, %arg2 : i32
    %c0_i32 = arith.constant 0 : i32
    %c0_i32_0 = arith.constant 0 : i32
    return %c0_i32, %1 : i32, i32
  }
  func.func @transform_1(%arg0: i32, %arg1: i32, %arg2: i32) -> (i32, i32) {
    %c1_i32 = arith.constant 1 : i32
    %0 = arith.muli %arg0, %c1_i32 : i32
    %1 = arith.addi %0, %arg2 : i32
    %c0_i32 = arith.constant 0 : i32
    %c0_i32_0 = arith.constant 0 : i32
    return %1, %c0_i32 : i32, i32
  }
  func.func @transform_2(%arg0: i32, %arg1: i32, %arg2: i32) -> (i32, i32, i32) {
    %c0_i32 = arith.constant 0 : i32
    %c0_i32_0 = arith.constant 0 : i32
    return %arg0, %arg1, %c0_i32 : i32, i32, i32
  }
  func.func @transform_3(%arg0: i32, %arg1: i32, %arg2: i32) -> (i32, i32, i32) {
    %c0_i32 = arith.constant 0 : i32
    %c0_i32_0 = arith.constant 0 : i32
    return %arg0, %arg1, %c0_i32 : i32, i32, i32
  }
}

</mosaic_0001>

<bundles_post_ra>
// kernel: tpu_custom_call.1
= control target key start
LH: loop header
LB: loop body
LE: loop exit
PB: predicated region body
PF: predicated region fallthrough
CT: control target
= control target key end

     0   :  { %v80_v14 = vlaneseq  ;;  %v463_v44 = vmov 0.0   ;;  %v464_v52 = vmov 1.0   ;;  %s897_s1 = inlined_call_operand.vmem [shape: f32[256,32], index: 1, kind: input, shape index: {}]   ;;  %s898_s0 = inlined_call_operand.vmem [shape: s32[1,256], index: 0, kind: input, shape index: {}]   ;;  %s899_s2 = inlined_call_operand.vmem [shape: f32[1,64,32], index: 2, kind: output, shape index: {0}]   ;;  %s900_s3 = inlined_call_operand.vmem [shape: f32[1,64,1], index: 3, kind: output, shape index: {1}]  }
   0x1   :  { %v217_v0 = vld [vmem:[%s897_s1 + $0xf8] sm:$0xff]  ;;  %v216_v2 = vld [vmem:[%s897_s1 + $0xf0] sm:$0xff]  ;;  %v215_v4 = vld [vmem:[%s897_s1 + $0xe8] sm:$0xff] }
   0x2   :  { %v201_v1 = vld [vmem:[%s897_s1 + $0x78] sm:$0xff]  ;;  %373 = vmatprep.subr.mxu0 %v217_v0  ;;  %429 = vmatprep.subr.mxu1 %v217_v0  ;;  %v200_v3 = vld [vmem:[%s897_s1 + $0x70] sm:$0xff]  ;;  %v199_v5 = vld [vmem:[%s897_s1 + $0x68] sm:$0xff]  ;;  %v539_v19 = vshrl.u32 %v80_v14, 7 }
   0x3   :  { %374 = vmatpush3.msra.mxu0 %v201_v1  ;;  %445 = vmatpush3.msra.mxu1 %v201_v1  ;;  %v214_v6 = vld [vmem:[%s897_s1 + $0xe0] sm:$0xff]  ;;  %v213_v8 = vld [vmem:[%s897_s1 + $0xd8] sm:$0xff]  ;;  %v212_v10 = vld [vmem:[%s897_s1 + $0xd0] sm:$0xff] }
   0x4   :  { %375 = vmatprep.subr.mxu0 %v216_v2  ;;  %430 = vmatprep.subr.mxu1 %v216_v2  ;;  %v198_v7 = vld [vmem:[%s897_s1 + $0x60] sm:$0xff]  ;;  %v197_v9 = vld [vmem:[%s897_s1 + $0x58] sm:$0xff]  ;;  %v196_v11 = vld [vmem:[%s897_s1 + $0x50] sm:$0xff]  ;;  %v95_v24 = vsub.s32 1, %v539_v19  ;;  %v91_v27 = vsub.s32 0, %v539_v19  ;;  %v578_v34 = vadd.s32 16, %v539_v19 }
   0x5   :  { %376 = vmatpush3.msra.mxu0 %v200_v3  ;;  %446 = vmatpush3.msra.mxu1 %v200_v3  ;;  %v211_v12 = vld [vmem:[%s897_s1 + $0xc8] sm:$0xff]  ;;  %v210_v15 = vld [vmem:[%s897_s1 + $0xc0] sm:$0xff]  ;;  %v209_v17 = vld [vmem:[%s897_s1 + $0xb8] sm:$0xff]  ;;  %v85_v37 = vadd.s32 32, %v539_v19  ;;  %v82_v38 = vadd.s32 8, %v539_v19  ;;  %v86_v40 = vadd.s32 40, %v539_v19 }
   0x6   :  { %377 = vmatprep.subr.mxu0 %v215_v4  ;;  %431 = vmatprep.subr.mxu1 %v215_v4  ;;  %v195_v13 = vld [vmem:[%s897_s1 + $0x48] sm:$0xff]  ;;  %v194_v16 = vld [vmem:[%s897_s1 + $0x40] sm:$0xff]  ;;  %v193_v18 = vld [vmem:[%s897_s1 + $0x38] sm:$0xff]  ;;  %v595_v41 = vadd.s32 24, %v539_v19  ;;  %v87_v49 = vadd.s32 48, %v539_v19  ;;  %v88_v57 = vadd.s32 56, %v539_v19 }
   0x7   :  { %378 = vmatpush3.msra.mxu0 %v199_v5  ;;  %447 = vmatpush3.msra.mxu1 %v199_v5  ;;  %v208_v20 = vld [vmem:[%s897_s1 + $0xb0] sm:$0xff]  ;;  %v207_v22 = vld [vmem:[%s897_s1 + $0xa8] sm:$0xff]  ;;  %v206_v25 = vld [vmem:[%s897_s1 + $0xa0] sm:$0xff] }
   0x8   :  { %379 = vmatprep.subr.mxu0 %v214_v6  ;;  %432 = vmatprep.subr.mxu1 %v214_v6  ;;  %v192_v21 = vld [vmem:[%s897_s1 + $0x30] sm:$0xff]  ;;  %v191_v23 = vld [vmem:[%s897_s1 + $0x28] sm:$0xff]  ;;  %v77_v26 = vld [vmem:[%s898_s0] sm:$0x3] }
   0x9   :  { %380 = vmatpush3.msra.mxu0 %v198_v7  ;;  %448 = vmatpush3.msra.mxu1 %v198_v7  ;;  %v190_v28 = vld [vmem:[%s897_s1 + $0x20] sm:$0xff]  ;;  %v205_v29 = vld [vmem:[%s897_s1 + $0x98] sm:$0xff]  ;;  %v570_v31 = vrot.slane %v77_v26, %v95_v24  ;;  %v204_v32 = vld [vmem:[%s897_s1 + $0x90] sm:$0xff]  ;;  %v575_v33 = vrot.slane %v77_v26, %v91_v27 }
   0xa   :  { %381 = vmatprep.subr.mxu0 %v213_v8  ;;  %433 = vmatprep.subr.mxu1 %v213_v8  ;;  %v189_v30 = vld [vmem:[%s897_s1 + $0x18] sm:$0xff]  ;;  %v188_v35 = vld [vmem:[%s897_s1 + $0x10] sm:$0xff]  ;;  %v203_v36 = vld [vmem:[%s897_s1 + $0x88] sm:$0xff] }
   0xb   :  { %382 = vmatpush3.msra.mxu0 %v197_v9  ;;  %449 = vmatpush3.msra.mxu1 %v197_v9  ;;  %v187_v39 = vld [vmem:[%s897_s1 + $0x8] sm:$0xff]  ;;  %vm98_vm0 = vcmp.eq.s32.totalorder %v539_v19, %v570_v31  ;;  %v202_v42 = vld [vmem:[%s897_s1 + $0x80] sm:$0xff]  ;;  %vm97_vm1 = vcmp.eq.s32.totalorder %v539_v19, %v575_v33  ;;  %vm102_vm2 = vcmp.eq.s32.totalorder %v578_v34, %v570_v31 }
   0xc   :  { %383 = vmatprep.subr.mxu0 %v212_v10  ;;  %434 = vmatprep.subr.mxu1 %v212_v10  ;;  %vm101_vm3 = vcmp.eq.s32.totalorder %v578_v34, %v575_v33  ;;  %v186_v43 = vld [vmem:[%s897_s1] sm:$0xff]  ;;  %v118_v46 = vsel %vm102_vm2, 1.0, %v463_v44  ;;  %v113_v47 = vsel %vm97_vm1, 1.0, %v463_v44  ;;  %v114_v48 = vsel %vm98_vm0, 1.0, %v463_v44 }
   0xd   :  { %384 = vmatpush3.msra.mxu0 %v196_v11  ;;  %450 = vmatpush3.msra.mxu1 %v196_v11  ;;  %v117_v45 = vsel %vm101_vm3, 1.0, %v463_v44  ;;  %vm106_vm4 = vcmp.eq.s32.totalorder %v85_v37, %v570_v31  ;;  %vm105_vm5 = vcmp.eq.s32.totalorder %v85_v37, %v575_v33  ;;  %vm100_vm6 = vcmp.eq.s32.totalorder %v82_v38, %v570_v31 }
   0xe   :  { %385 = vmatprep.subr.mxu0 %v211_v12  ;;  %435 = vmatprep.subr.mxu1 %v211_v12  ;;  %vm108_vm7 = vcmp.eq.s32.totalorder %v86_v40, %v570_v31  ;;  %vm99_vm8 = vcmp.eq.s32.totalorder %v82_v38, %v575_v33  ;;  %vm104_vm9 = vcmp.eq.s32.totalorder %v595_v41, %v570_v31  ;;  %v116_v56 = vsel %vm100_vm6, 1.0, %v463_v44 }
   0xf   :  { %386 = vmatpush3.msra.mxu0 %v195_v13  ;;  %451 = vmatpush3.msra.mxu1 %v195_v13  ;;  %vm103_vm10 = vcmp.eq.s32.totalorder %v595_v41, %v575_v33  ;;  %v143_v50 = vadd.f32 %v118_v46, %v117_v45  ;;  %v137_v51 = vadd.f32 %v114_v48, %v113_v47  ;;  %v120_v54 = vsel %vm104_vm9, 1.0, %v463_v44 }
  0x10   :  { %387 = vmatprep.subr.mxu0 %v210_v15  ;;  %436 = vmatprep.subr.mxu1 %v210_v15  ;;  %v119_v53 = vsel %vm103_vm10, 1.0, %v463_v44  ;;  %v115_v55 = vsel %vm99_vm8, 1.0, %v463_v44  ;;  %vm107_vm11 = vcmp.eq.s32.totalorder %v86_v40, %v575_v33  ;;  %vm110_vm12 = vcmp.eq.s32.totalorder %v87_v49, %v570_v31 }
  0x11   :  { %388 = vmatpush3.msra.mxu0 %v194_v16  ;;  %452 = vmatpush3.msra.mxu1 %v194_v16  ;;  %v146_v58 = vadd.f32 %v120_v54, %v119_v53  ;;  %v140_v59 = vadd.f32 %v116_v56, %v115_v55  ;;  %v122_v60 = vsel %vm106_vm4, 1.0, %v463_v44  ;;  %v123_v61 = vsel %vm107_vm11, 1.0, %v463_v44 }
  0x12   :  { %389 = vmatprep.subr.mxu0 %v209_v17  ;;  %437 = vmatprep.subr.mxu1 %v209_v17  ;;  %v124_v62 = vsel %vm108_vm7, 1.0, %v463_v44  ;;  %v121_v63 = vsel %vm105_vm5, 1.0, %v463_v44  ;;  %vm109_vm13 = vcmp.eq.s32.totalorder %v87_v49, %v575_v33  ;;  %vm112_vm14 = vcmp.eq.s32.totalorder %v88_v57, %v570_v31 }
  0x13   :  { %390 = vmatpush3.msra.mxu0 %v193_v18  ;;  %453 = vmatpush3.msra.mxu1 %v193_v18  ;;  %vm111_vm15 = vcmp.eq.s32.totalorder %v88_v57, %v575_v33  ;;  %v152_v0 = vadd.f32 %v124_v62, %v123_v61  ;;  %v149_v1 = vadd.f32 %v122_v60, %v121_v63  ;;  %v128_v3 = vsel %vm112_vm14, 1.0, %v463_v44 }
  0x14   :  { %391 = vmatprep.subr.mxu0 %v208_v20  ;;  %438 = vmatprep.subr.mxu1 %v208_v20  ;;  %v127_v2 = vsel %vm111_vm15, 1.0, %v463_v44  ;;  %v125_v4 = vsel %vm109_vm13, 1.0, %v463_v44  ;;  %v126_v5 = vsel %vm110_vm12, 1.0, %v463_v44 }
  0x15   :  { %392 = vmatpush3.msra.mxu0 %v192_v21  ;;  %454 = vmatpush3.msra.mxu1 %v192_v21  ;;  %v158_v6 = vadd.f32 %v128_v3, %v127_v2  ;;  %v155_v7 = vadd.f32 %v126_v5, %v125_v4 }
  0x16   :  { %393 = vmatprep.subr.mxu0 %v207_v22  ;;  %439 = vmatprep.subr.mxu1 %v207_v22 }
  0x17   :  { %394 = vmatpush3.msra.mxu0 %v191_v23  ;;  %455 = vmatpush3.msra.mxu1 %v191_v23 }
  0x18   :  { %395 = vmatprep.subr.mxu0 %v206_v25  ;;  %440 = vmatprep.subr.mxu1 %v206_v25 }
  0x19   :  { %396 = vmatpush3.msra.mxu0 %v190_v28  ;;  %456 = vmatpush3.msra.mxu1 %v190_v28 }
  0x1a   :  { %397 = vmatprep.subr.mxu0 %v205_v29  ;;  %441 = vmatprep.subr.mxu1 %v205_v29 }
  0x1b   :  { %398 = vmatpush3.msra.mxu0 %v189_v30  ;;  %457 = vmatpush3.msra.mxu1 %v189_v30 }
  0x1c   :  { %399 = vmatprep.subr.mxu0 %v204_v32  ;;  %442 = vmatprep.subr.mxu1 %v204_v32 }
  0x1d   :  { %400 = vmatpush3.msra.mxu0 %v188_v35  ;;  %458 = vmatpush3.msra.mxu1 %v188_v35 }
  0x1e   :  { %401 = vmatprep.subr.mxu0 %v203_v36  ;;  %443 = vmatprep.subr.mxu1 %v203_v36 }
  0x1f   :  { %402 = vmatpush3.msra.mxu0 %v187_v39  ;;  %459 = vmatpush3.msra.mxu1 %v187_v39 }
  0x20   :  { %403 = vmatprep.subr.mxu0 %v202_v42  ;;  %444 = vmatprep.subr.mxu1 %v202_v42 }
  0x21   :  { %404 = vmatpush3.msra.mxu0 %v186_v43  ;;  %460 = vmatpush3.msra.mxu1 %v186_v43 }
  0x22   :  { %357 = vmatprep.mubr.msk.f32.mxu0 %vm98_vm0, %v464_v52  ;;  %365 = vmatprep.mubr.msk.f32.mxu1 %vm106_vm4, %v464_v52  ;;  %vm58_vm0 = vcmask 261120  }
  0x23   :  { %358 = vmatmul.mubr.msk.f32.vlgmr.msra.gmra.mxu0 %vm97_vm1, %v464_v52  ;;  %366 = vmatmul.mubr.msk.f32.vlgmr.msra.gmra.mxu1 %vm105_vm5, %v464_v52  ;;  %vm67_vm1 = vcmask 7168   ;;  %59 = vst.msk [vmem:[%s899_s2] sm:$0xff] %vm58_vm0, %v463_v44  ;;  %60 = vst.msk [vmem:[%s899_s2 + $0x8] sm:$0xff] %vm58_vm0, %v463_v44 }
  0x24   :  { %359 = vmatprep.mubr.msk.f32.mxu0 %vm100_vm6, %v464_v52  ;;  %367 = vmatprep.mubr.msk.f32.mxu1 %vm108_vm7, %v464_v52  ;;  %61 = vst.msk [vmem:[%s899_s2 + $0x10] sm:$0xff] %vm58_vm0, %v463_v44  ;;  %62 = vst.msk [vmem:[%s899_s2 + $0x18] sm:$0xff] %vm58_vm0, %v463_v44 }
  0x25   :  { %144 = vadd.xlane.f32.xlu1 %v143_v50  ;;  %138 = vadd.xlane.f32.xlu0 %v137_v51  ;;  %63 = vst.msk [vmem:[%s899_s2 + $0x20] sm:$0xff] %vm58_vm0, %v463_v44  ;;  %64 = vst.msk [vmem:[%s899_s2 + $0x28] sm:$0xff] %vm58_vm0, %v463_v44 }
  0x26   :  { %65 = vst.msk [vmem:[%s899_s2 + $0x30] sm:$0xff] %vm58_vm0, %v463_v44  ;;  %66 = vst.msk [vmem:[%s899_s2 + $0x38] sm:$0xff] %vm58_vm0, %v463_v44 }
  0x27   :  { %360 = vmatmul.mubr.msk.f32.gmra.mxu0 %vm99_vm8, %v464_v52  ;;  %368 = vmatmul.mubr.msk.f32.gmra.mxu1 %vm107_vm11, %v464_v52  ;;  %70 = vst.msk [vmem:[%s900_s3 + $0x10] sm:$0xff] %vm67_vm1, %v463_v44  ;;  %68 = vst.msk [vmem:[%s900_s3] sm:$0xff] %vm67_vm1, %v463_v44 }
  0x28   :  { %361 = vmatprep.mubr.msk.f32.mxu0 %vm102_vm2, %v464_v52  ;;  %369 = vmatprep.mubr.msk.f32.mxu1 %vm110_vm12, %v464_v52  ;;  %69 = vst.msk [vmem:[%s900_s3 + $0x8] sm:$0xff] %vm67_vm1, %v463_v44  ;;  %71 = vst.msk [vmem:[%s900_s3 + $0x18] sm:$0xff] %vm67_vm1, %v463_v44 }
  0x29   :  { %147 = vadd.xlane.f32.xlu1 %v146_v58  ;;  %141 = vadd.xlane.f32.xlu0 %v140_v59  ;;  %72 = vst.msk [vmem:[%s900_s3 + $0x20] sm:$0xff] %vm67_vm1, %v463_v44  ;;  %73 = vst.msk [vmem:[%s900_s3 + $0x28] sm:$0xff] %vm67_vm1, %v463_v44 }
  0x2a   :  { %74 = vst.msk [vmem:[%s900_s3 + $0x30] sm:$0xff] %vm67_vm1, %v463_v44  ;;  %75 = vst.msk [vmem:[%s900_s3 + $0x38] sm:$0xff] %vm67_vm1, %v463_v44  ;;  %v178_v34 = vld [vmem:[%s899_s2] sm:$0xff]  ;;  %v179_v44 = vld [vmem:[%s899_s2 + $0x8] sm:$0xff] }
  0x2b   :  { %362 = vmatmul.mubr.msk.f32.gmra.mxu0 %vm101_vm3, %v464_v52  ;;  %370 = vmatmul.mubr.msk.f32.gmra.mxu1 %vm109_vm13, %v464_v52  ;;  %v180_v54 = vld [vmem:[%s899_s2 + $0x10] sm:$0xff] }
  0x2c   :  { %363 = vmatprep.mubr.msk.f32.mxu0 %vm104_vm9, %v464_v52  ;;  %371 = vmatprep.mubr.msk.f32.mxu1 %vm112_vm14, %v464_v52  ;;  %v182_v36 = vld [vmem:[%s899_s2 + $0x20] sm:$0xff]  ;;  %v183_v46 = vld [vmem:[%s899_s2 + $0x28] sm:$0xff] }
  0x2d   :  { %153 = vadd.xlane.f32.xlu1 %v152_v0  ;;  %150 = vadd.xlane.f32.xlu0 %v149_v1  ;;  %v184_v56 = vld [vmem:[%s899_s2 + $0x30] sm:$0xff]  ;;  %v181_v0 = vld [vmem:[%s899_s2 + $0x18] sm:$0xff] }
  0x2e   :  { %v131_v8 = vld [vmem:[%s900_s3 + $0x10] sm:$0xff]  ;;  %v129_v9 = vld [vmem:[%s900_s3] sm:$0xff]  ;;  %v185_v2 = vld [vmem:[%s899_s2 + $0x38] sm:$0xff] }
  0x2f   :  { %364 = vmatmul.mubr.msk.f32.gmra.mxu0 %vm103_vm10, %v464_v52  ;;  %372 = vmatmul.mubr.msk.f32.gmra.mxu1 %vm111_vm15, %v464_v52  ;;  %v132_v14 = vld [vmem:[%s900_s3 + $0x18] sm:$0xff]  ;;  %v130_v15 = vld [vmem:[%s900_s3 + $0x8] sm:$0xff] }
  0x30   :  { %v134_v20 = vld [vmem:[%s900_s3 + $0x28] sm:$0xff]  ;;  %v133_v21 = vld [vmem:[%s900_s3 + $0x20] sm:$0xff] }
  0x31   :  { %159 = vadd.xlane.f32.xlu1 %v158_v6  ;;  %156 = vadd.xlane.f32.xlu0 %v155_v7  ;;  %v136_v26 = vld [vmem:[%s900_s3 + $0x38] sm:$0xff]  ;;  %v135_v27 = vld [vmem:[%s900_s3 + $0x30] sm:$0xff] }
  0xae   :  { %v145_v10 = vpop.xlane.xlu1 %144  ;;  %v139_v11 = vpop.xlane.xlu0 %138 }
  0xaf   :  { %v163_v12 = vadd.f32 %v145_v10, %v131_v8  ;;  %v161_v13 = vadd.f32 %v139_v11, %v129_v9 }
  0xb1   :  { %172 = vst.msk [vmem:[%s900_s3 + $0x10] sm:$0xff] %vm67_vm1, %v163_v12  ;;  %170 = vst.msk [vmem:[%s900_s3] sm:$0xff] %vm67_vm1, %v161_v13 }
  0xb2   :  { %v148_v16 = vpop.xlane.xlu1 %147  ;;  %v142_v17 = vpop.xlane.xlu0 %141 }
  0xb3   :  { %v164_v18 = vadd.f32 %v148_v16, %v132_v14  ;;  %v162_v19 = vadd.f32 %v142_v17, %v130_v15 }
  0xb5   :  { %173 = vst.msk [vmem:[%s900_s3 + $0x18] sm:$0xff] %vm67_vm1, %v164_v18  ;;  %171 = vst.msk [vmem:[%s900_s3 + $0x8] sm:$0xff] %vm67_vm1, %v162_v19 }
  0xb6   :  { %v154_v22 = vpop.xlane.xlu1 %153  ;;  %v151_v23 = vpop.xlane.xlu0 %150 }
  0xb7   :  { %v166_v24 = vadd.f32 %v154_v22, %v134_v20  ;;  %v165_v25 = vadd.f32 %v151_v23, %v133_v21 }
  0xb9   :  { %175 = vst.msk [vmem:[%s900_s3 + $0x28] sm:$0xff] %vm67_vm1, %v166_v24  ;;  %174 = vst.msk [vmem:[%s900_s3 + $0x20] sm:$0xff] %vm67_vm1, %v165_v25 }
  0xba   :  { %v160_v28 = vpop.xlane.xlu1 %159  ;;  %v157_v29 = vpop.xlane.xlu0 %156 }
  0xbb   :  { %v168_v30 = vadd.f32 %v160_v28, %v136_v26  ;;  %v167_v31 = vadd.f32 %v157_v29, %v135_v27 }
  0xbd   :  { %177 = vst.msk [vmem:[%s900_s3 + $0x38] sm:$0xff] %vm67_vm1, %v168_v30  ;;  %176 = vst.msk [vmem:[%s900_s3 + $0x30] sm:$0xff] %vm67_vm1, %v167_v31 }
  0xe3   :  { %v405_v32 = vpop.f32.mrf.mxu0  ;;  %v417_v33 = vpop.f32.mrf.mxu1 }
  0xe5   :  { %v406_v35 = vpop.f32.mrf.mxu0  ;;  %v418_v37 = vpop.f32.mrf.mxu1 }
  0xe6   :  { %v407_v38 = vadd.f32 %v406_v35, %v405_v32  ;;  %v419_v39 = vadd.f32 %v418_v37, %v417_v33 }
  0xe7   :  { %v420_v40 = vpop.f32.mrf.mxu1  ;;  %v408_v41 = vpop.f32.mrf.mxu0 }
  0xe8   :  { %v323_v42 = vadd.f32 %v407_v38, %v178_v34  ;;  %v327_v43 = vadd.f32 %v419_v39, %v182_v36 }
  0xe9   :  { %v409_v45 = vpop.f32.mrf.mxu0  ;;  %v421_v47 = vpop.f32.mrf.mxu1 }
  0xea   :  { %332 = vst.msk [vmem:[%s899_s2] sm:$0xff] %vm58_vm0, %v323_v42  ;;  %336 = vst.msk [vmem:[%s899_s2 + $0x20] sm:$0xff] %vm58_vm0, %v327_v43  ;;  %v410_v48 = vadd.f32 %v409_v45, %v408_v41  ;;  %v422_v49 = vadd.f32 %v421_v47, %v420_v40 }
  0xeb   :  { %v423_v50 = vpop.f32.mrf.mxu1  ;;  %v411_v51 = vpop.f32.mrf.mxu0 }
  0xec   :  { %v324_v52 = vadd.f32 %v410_v48, %v179_v44  ;;  %v328_v53 = vadd.f32 %v422_v49, %v183_v46 }
  0xed   :  { %v412_v55 = vpop.f32.mrf.mxu0  ;;  %v424_v57 = vpop.f32.mrf.mxu1 }
  0xee   :  { %333 = vst.msk [vmem:[%s899_s2 + $0x8] sm:$0xff] %vm58_vm0, %v324_v52  ;;  %337 = vst.msk [vmem:[%s899_s2 + $0x28] sm:$0xff] %vm58_vm0, %v328_v53  ;;  %v413_v58 = vadd.f32 %v412_v55, %v411_v51  ;;  %v425_v59 = vadd.f32 %v424_v57, %v423_v50 }
  0xef   :  { %v426_v60 = vpop.f32.mrf.mxu1  ;;  %v414_v61 = vpop.f32.mrf.mxu0 }
  0xf0   :  { %v325_v62 = vadd.f32 %v413_v58, %v180_v54  ;;  %v329_v63 = vadd.f32 %v425_v59, %v184_v56 }
  0xf1   :  { %v415_v1 = vpop.f32.mrf.mxu0  ;;  %v427_v3 = vpop.f32.mrf.mxu1 }
  0xf2   :  { %334 = vst.msk [vmem:[%s899_s2 + $0x10] sm:$0xff] %vm58_vm0, %v325_v62  ;;  %338 = vst.msk [vmem:[%s899_s2 + $0x30] sm:$0xff] %vm58_vm0, %v329_v63  ;;  %v416_v4 = vadd.f32 %v415_v1, %v414_v61  ;;  %v428_v5 = vadd.f32 %v427_v3, %v426_v60 }
  0xf4   :  { %v326_v6 = vadd.f32 %v416_v4, %v181_v0  ;;  %v330_v7 = vadd.f32 %v428_v5, %v185_v2 }
  0xf6   :  { %335 = vst.msk [vmem:[%s899_s2 + $0x18] sm:$0xff] %vm58_vm0, %v326_v6  ;;  %339 = vst.msk [vmem:[%s899_s2 + $0x38] sm:$0xff] %vm58_vm0, %v330_v7 }

</bundles_post_ra>
